<compile_context>
chip_gen: v5e
topology: v5e:2x2
jax: 0.10.0
libtpu: 0.0.40
codegen_flags: <defaults>
</compile_context>

<pallas_src>
import functools

import jax
import jax.numpy as jnp
from jax.experimental import pallas as pl
from jax.experimental.pallas import tpu as pltpu


def _round_up(x, m):
    return (x + m - 1) // m * m


def _self_attention_kernel(x_ref, w_ref, b_ref, o_ref, *, dim, kv_tile):
    """One grid step: a (Bt, S, Dp) batch-block of the input."""
    bt, s, dp = x_ref.shape
    cdtype = x_ref.dtype                         # MXU operand dtype (bf16 stays bf16)

    # ---- Fused QKV projection: one (Bt*S, Dp) x (Dp, 3Dp) MXU matmul ----
    x2 = x_ref[...].reshape(bt * s, dp)          # leading-dim collapse, no relayout
    qkv = jnp.dot(x2, w_ref[...], preferred_element_type=jnp.float32)
    # Bias-add, then a single downcast of the whole tensor (halves the widest
    # live intermediate vs keeping the f32 copy around and casting k/v twice).
    qkv = (qkv + b_ref[...].astype(jnp.float32)).astype(cdtype)

    # Lane-aligned slices: Dp is a multiple of 128, so each projection block
    # falls on a 128-lane boundary (no relayout copies).
    scale = 1.0 / (float(dim) ** 0.5)            # original dim, not padded Dp
    q = (qkv[:, 0 * dp:1 * dp] * scale).reshape(bt, s, dp)  # fold 1/sqrt(d) into q
    k = qkv[:, 1 * dp:2 * dp].reshape(bt, s, dp)
    v = qkv[:, 2 * dp:3 * dp].reshape(bt, s, dp)

    # ---- Flash-style attention: online softmax over KV tiles ----
    # TODO(synk): confirm via pl.lower_as_mlir that the bqd,bkd->bqk einsum maps
    # to the MXU with a transposed RHS and no materialized XLU transpose of k.
    num_tiles = s // kv_tile                     # static; kv_tile divides s
    m = l = acc = None
    for t in range(num_tiles):                   # static unroll; bounded dataflow
        k_t = k[:, t * kv_tile:(t + 1) * kv_tile, :]
        v_t = v[:, t * kv_tile:(t + 1) * kv_tile, :]
        s_t = jnp.einsum("bqd,bkd->bqk", q, k_t,
                         preferred_element_type=jnp.float32)  # (Bt, S, kv_tile) f32
        m_t = jnp.max(s_t, axis=-1, keepdims=True)
        if t == 0:
            m = m_t
            p = jnp.exp(s_t - m)
            l = jnp.sum(p, axis=-1, keepdims=True)
            acc = jnp.einsum("bqk,bkd->bqd", p.astype(cdtype), v_t,
                             preferred_element_type=jnp.float32)
        else:
            m_new = jnp.maximum(m, m_t)
            alpha = jnp.exp(m - m_new)
            p = jnp.exp(s_t - m_new)
            l = alpha * l + jnp.sum(p, axis=-1, keepdims=True)
            acc = alpha * acc + jnp.einsum("bqk,bkd->bqd", p.astype(cdtype), v_t,
                                           preferred_element_type=jnp.float32)
            m = m_new

    # Deferred normalization after the PV matmul: scales Bt*S*Dp elements
    # instead of Bt*S*S, with the reciprocal on the EUP (free slot).
    y = acc * pl.reciprocal(l, approx=True)
    o_ref[...] = y.astype(o_ref.dtype)


def _choose_block_b(batch, seq, target_rows=512):
    """Batches per grid step: enough rows (Bt*S) to amortize the ~0.35us per-step
    overhead and feed the MXU, but capped at B//2 so the grid keeps >= 2 steps
    (v7x shards 'parallel' grid axes across its 2 TensorCores)."""
    cap = batch // 2 if batch >= 2 else 1
    want = max(1, target_rows // max(seq, 1))
    upper = max(1, min(batch, cap, want))
    best = 1
    for cand in range(1, upper + 1):
        if batch % cand == 0:
            best = cand
    return best


def _choose_kv_tile(seq, max_tile=512):
    """Largest divisor of S that is <= max_tile, preferring 128-lane multiples."""
    if seq <= max_tile:
        return seq
    for cand in range(max_tile - (max_tile % 128), 0, -128):   # lane-aligned first
        if cand and seq % cand == 0:
            return cand
    for cand in range(max_tile, 0, -1):
        if seq % cand == 0:
            return cand
    return seq


def self_attention(x, wq, bq, wk, bk, wv, bv, *, block_b=None, kv_tile=None):
    """Self-attention matching the PyTorch module.

    x: (B, S, D); wq/wk/wv: (D, D) nn.Linear weights ((out, in) layout);
    bq/bk/bv: (D,) biases.  Returns (B, S, D) in x.dtype.
    """
    B, S, D = x.shape
    cdtype = x.dtype
    for w in (wq, wk, wv):
        assert w.shape == (D, D)
    for b in (bq, bk, bv):
        assert b.shape == (D,)

    # Pad the feature dim to a multiple of 128 lanes so q/k/v column slices are
    # lane-aligned and output stores are lane-dense (un-masked vst).  Padded
    # weight rows/cols and bias entries are zero, so the math is unchanged.
    Dp = _round_up(D, 128)
    pad_d = Dp - D

    def prep_w(w):   # (out, in) -> (in, out), zero-pad to (Dp, Dp)
        wt = jnp.asarray(w, cdtype).T
        return jnp.pad(wt, ((0, pad_d), (0, pad_d))) if pad_d else wt

    def prep_b(b):
        bb = jnp.asarray(b, cdtype).reshape(1, D)
        return jnp.pad(bb, ((0, 0), (0, pad_d))) if pad_d else bb

    w_qkv = jnp.concatenate([prep_w(wq), prep_w(wk), prep_w(wv)], axis=1)  # (Dp, 3Dp)
    b_qkv = jnp.concatenate([prep_b(bq), prep_b(bk), prep_b(bv)], axis=1)  # (1, 3Dp)
    xp = jnp.pad(x, ((0, 0), (0, 0), (0, pad_d))) if pad_d else x

    if block_b is None:
        block_b = _choose_block_b(B, S)
    assert B % block_b == 0
    if kv_tile is None:
        kv_tile = _choose_kv_tile(S)
    assert S % kv_tile == 0
    grid = (B // block_b,)

    x_spec = pl.BlockSpec((block_b, S, Dp), lambda b: (b, 0, 0))
    # Grid-invariant weights/bias: fetched once; single-buffer them so the
    # default double-buffering doesn't waste a second VMEM copy of the weight.
    w_spec = pl.BlockSpec((Dp, 3 * Dp), lambda b: (0, 0),
                          pipeline_mode=pl.Buffered(buffer_count=1))
    b_spec = pl.BlockSpec((1, 3 * Dp), lambda b: (0, 0),
                          pipeline_mode=pl.Buffered(buffer_count=1))
    # TODO(synk): on v5e sweep pipeline_mode=pl.Buffered(3) on x_spec/out_spec
    # (mem-bound kernel, slower HBM) — left at the default depth here.

    kernel = functools.partial(_self_attention_kernel, dim=D, kv_tile=kv_tile)

    out = pl.pallas_call(
        kernel,
        out_shape=jax.ShapeDtypeStruct((B, S, Dp), cdtype),
        grid_spec=pltpu.PrefetchScalarGridSpec(
            num_scalar_prefetch=0,
            grid=grid,
            in_specs=[x_spec, w_spec, b_spec],
            out_specs=x_spec,
        ),
        compiler_params=pltpu.CompilerParams(
            dimension_semantics=("parallel",),
            # 48 MiB leaves headroom for Mosaic internal scratch inside v7x's
            # 64 MiB physical VMEM; well under v5e/v6e's 128 MiB.
            vmem_limit_bytes=48 << 20,
        ),
    )(xp, w_qkv, b_qkv)

    return out[..., :D] if pad_d else out


def self_attention_ref(x, wq, bq, wk, bk, wv, bv):
    q = x @ wq.T + bq
    k = x @ wk.T + bk
    v = x @ wv.T + bv
    d = x.shape[-1]
    s = jnp.einsum("bqd,bkd->bqk", q, k) / jnp.sqrt(jnp.float32(d))
    a = jax.nn.softmax(s, axis=-1)
    return jnp.einsum("bqk,bkd->bqd", a, v)


if __name__ == "__main__":
    B, S, D = 2, 8, 32

    key = jax.random.PRNGKey(0)
    kx, kwq, kbq, kwk, kbk, kwv, kbv = jax.random.split(key, 7)

    x = jax.random.normal(kx, (B, S, D), dtype=jnp.float32)

    # Deterministic synthetic parameters in PyTorch nn.Linear(dim, dim) layout:
    # weight (out, in), bias (out,).
    lim = 1.0 / jnp.sqrt(jnp.float32(D))
    wq = jax.random.uniform(kwq, (D, D), jnp.float32, -lim, lim)
    wk = jax.random.uniform(kwk, (D, D), jnp.float32, -lim, lim)
    wv = jax.random.uniform(kwv, (D, D), jnp.float32, -lim, lim)
    bq = jax.random.uniform(kbq, (D,), jnp.float32, -lim, lim)
    bk = jax.random.uniform(kbk, (D,), jnp.float32, -lim, lim)
    bv = jax.random.uniform(kbv, (D,), jnp.float32, -lim, lim)

    # f32 operand path: primary correctness check (tolerance absorbs the
    # approximate EUP reciprocal in the softmax normalization).
    y = self_attention(x, wq, bq, wk, bk, wv, bv)
    jax.block_until_ready(y)
    y_ref = self_attention_ref(x, wq, bq, wk, bk, wv, bv)
    assert y.shape == (B, S, D)
    assert jnp.allclose(y, y_ref, atol=1e-2, rtol=1e-2), "f32 mismatch vs reference"

    # bf16 operand path (the intended production dtype: MXU-native operands with
    # f32 accumulation inside the kernel).  Loose tolerance = bf16 input rounding.
    to_bf16 = lambda a: a.astype(jnp.bfloat16)
    yb = self_attention(to_bf16(x), to_bf16(wq), to_bf16(bq), to_bf16(wk),
                        to_bf16(bk), to_bf16(wv), to_bf16(bv))
    jax.block_until_ready(yb)
    assert yb.shape == (B, S, D) and yb.dtype == jnp.bfloat16
    assert jnp.allclose(yb.astype(jnp.float32), y_ref, atol=1e-1, rtol=1e-1), \
        "bf16 mismatch vs reference"

    print("KERNEL_OK")
</pallas_src>

<mosaic_0001>
module attributes {stable_mosaic.version = 11 : i64} {
  func.func @_self_attention_kernel(%arg0: i32, %arg1: memref<1x8x128xf32, #tpu.memory_space<vmem>>, %arg2: memref<128x384xf32, #tpu.memory_space<vmem>>, %arg3: memref<1x384xf32, #tpu.memory_space<vmem>>, %arg4: memref<1x8x128xf32, #tpu.memory_space<vmem>>) attributes {dimension_semantics = [#tpu.dimension_semantics<parallel>], iteration_bounds = array<i64: 2>, scalar_prefetch = 0 : i64, scratch_operands = 0 : i64, tpu.core_type = #tpu.core_type<tc>, window_params = [{transform_indices = @transform_0, window_bounds = array<i64: 1, 8, 128>}, {pipeline_mode = #tpu.pipeline_mode<synchronous>, transform_indices = @transform_1, window_bounds = array<i64: 128, 384>}, {pipeline_mode = #tpu.pipeline_mode<synchronous>, transform_indices = @transform_2, window_bounds = array<i64: 1, 384>}, {transform_indices = @transform_3, window_bounds = array<i64: 1, 8, 128>}]} {
    %c0 = arith.constant 0 : index
    %c0_0 = arith.constant 0 : index
    %c0_1 = arith.constant 0 : index
    %0 = vector.load %arg1[%c0, %c0_0, %c0_1] : memref<1x8x128xf32, #tpu.memory_space<vmem>>, vector<1x8x128xf32>
    %1 = vector.shape_cast %0 : vector<1x8x128xf32> to vector<8x128xf32>
    %c0_2 = arith.constant 0 : index
    %c0_3 = arith.constant 0 : index
    %2 = vector.load %arg2[%c0_2, %c0_3] : memref<128x384xf32, #tpu.memory_space<vmem>>, vector<128x384xf32>
    %cst = arith.constant dense<0.000000e+00> : vector<8x384xf32>
    %3 = tpu.matmul %1, %2, %cst {dimension_numbers = #tpu.dot_dimension_numbers<[1], [0], [0], [1], [0, 0, 1, 1], [], []>} : vector<8x128xf32>, vector<128x384xf32>, vector<8x384xf32> -> vector<8x384xf32>
    %c0_4 = arith.constant 0 : index
    %c0_5 = arith.constant 0 : index
    %4 = vector.load %arg3[%c0_4, %c0_5] : memref<1x384xf32, #tpu.memory_space<vmem>>, vector<1x384xf32>
    %5 = vector.broadcast %4 : vector<1x384xf32> to vector<8x384xf32>
    %6 = arith.addf %3, %5 : vector<8x384xf32>
    %7 = vector.extract_strided_slice %6 {offsets = [0, 0], sizes = [8, 128], strides = [1, 1]} : vector<8x384xf32> to vector<8x128xf32>
    %cst_6 = arith.constant 0.176776692 : f32
    %8 = vector.broadcast %cst_6 : f32 to vector<8x128xf32>
    %9 = arith.mulf %7, %8 : vector<8x128xf32>
    %10 = vector.shape_cast %9 : vector<8x128xf32> to vector<1x8x128xf32>
    %11 = vector.extract_strided_slice %6 {offsets = [0, 128], sizes = [8, 128], strides = [1, 1]} : vector<8x384xf32> to vector<8x128xf32>
    %12 = vector.shape_cast %11 : vector<8x128xf32> to vector<1x8x128xf32>
    %13 = vector.extract_strided_slice %6 {offsets = [0, 256], sizes = [8, 128], strides = [1, 1]} : vector<8x384xf32> to vector<8x128xf32>
    %14 = vector.shape_cast %13 : vector<8x128xf32> to vector<1x8x128xf32>
    "tpu.trace_start"() <{level = 10 : i32, message = "bqd,bkd->bqk"}> : () -> ()
    %cst_7 = arith.constant dense<0.000000e+00> : vector<1x8x8xf32>
    %15 = tpu.matmul %10, %12, %cst_7 {dimension_numbers = #tpu.dot_dimension_numbers<[2], [2], [1], [1], [0, 0, 0, 1, 1, 1], [0], [0]>} : vector<1x8x128xf32>, vector<1x8x128xf32>, vector<1x8x8xf32> -> vector<1x8x8xf32>
    "tpu.trace_stop"() : () -> ()
    %cst_8 = arith.constant dense<0xFF800000> : vector<1x8xf32>
    %16 = vector.multi_reduction <maximumf>, %15, %cst_8 [2] : vector<1x8x8xf32> to vector<1x8xf32>
    %17 = vector.shape_cast %16 : vector<1x8xf32> to vector<1x8x1xf32>
    %18 = vector.broadcast %17 : vector<1x8x1xf32> to vector<1x8x8xf32>
    %19 = arith.subf %15, %18 : vector<1x8x8xf32>
    %20 = math.exp %19 : vector<1x8x8xf32>
    %cst_9 = arith.constant dense<0.000000e+00> : vector<1x8xf32>
    %21 = vector.multi_reduction <add>, %20, %cst_9 [2] : vector<1x8x8xf32> to vector<1x8xf32>
    %22 = vector.shape_cast %21 : vector<1x8xf32> to vector<1x8x1xf32>
    "tpu.trace_start"() <{level = 10 : i32, message = "bqk,bkd->bqd"}> : () -> ()
    %cst_10 = arith.constant dense<0.000000e+00> : vector<1x8x128xf32>
    %23 = tpu.matmul %20, %14, %cst_10 {dimension_numbers = #tpu.dot_dimension_numbers<[2], [1], [1], [2], [0, 0, 0, 1, 1, 2], [0], [0]>} : vector<1x8x8xf32>, vector<1x8x128xf32>, vector<1x8x128xf32> -> vector<1x8x128xf32>
    "tpu.trace_stop"() : () -> ()
    %24 = tpu.reciprocal %22 {approx = true} : vector<1x8x1xf32> -> vector<1x8x1xf32>
    %25 = vector.broadcast %24 : vector<1x8x1xf32> to vector<1x8x128xf32>
    %26 = arith.mulf %23, %25 : vector<1x8x128xf32>
    %c0_11 = arith.constant 0 : index
    %c0_12 = arith.constant 0 : index
    %c0_13 = arith.constant 0 : index
    %27 = vector.load %arg4[%c0_11, %c0_12, %c0_13] : memref<1x8x128xf32, #tpu.memory_space<vmem>>, vector<1x8x128xf32>
    tpu.vector_store %arg4[%c0_11, %c0_12, %c0_13], %26 {strides = array<i32>} : memref<1x8x128xf32, #tpu.memory_space<vmem>>, vector<1x8x128xf32>,
    return
  }
  func.func @transform_0(%arg0: i32) -> (i32, i32, i32) {
    %c0_i32 = arith.constant 0 : i32
    %c0_i32_0 = arith.constant 0 : i32
    %c0_i32_1 = arith.constant 0 : i32
    return %arg0, %c0_i32, %c0_i32_0 : i32, i32, i32
  }
  func.func @transform_1(%arg0: i32) -> (i32, i32) {
    %c0_i32 = arith.constant 0 : i32
    %c0_i32_0 = arith.constant 0 : i32
    %c0_i32_1 = arith.constant 0 : i32
    return %c0_i32, %c0_i32_0 : i32, i32
  }
  func.func @transform_2(%arg0: i32) -> (i32, i32) {
    %c0_i32 = arith.constant 0 : i32
    %c0_i32_0 = arith.constant 0 : i32
    %c0_i32_1 = arith.constant 0 : i32
    return %c0_i32, %c0_i32_0 : i32, i32
  }
  func.func @transform_3(%arg0: i32) -> (i32, i32, i32) {
    %c0_i32 = arith.constant 0 : i32
    %c0_i32_0 = arith.constant 0 : i32
    %c0_i32_1 = arith.constant 0 : i32
    return %arg0, %c0_i32, %c0_i32_0 : i32, i32, i32
  }
}

</mosaic_0001>

<bundles_post_ra>
// kernel: tpu_custom_call.1
= control target key start
LH: loop header
LB: loop body
LE: loop exit
PB: predicated region body
PF: predicated region fallthrough
CT: control target
= control target key end

     0   :  { %8 = vsyncpa [#allocation3], 0  ;;  %s926_s0 = inlined_call_operand.hbm [shape: f32[2,8,128], index: 0, kind: input, shape index: {}]   ;;  %s927_s1 = inlined_call_operand.hbm [shape: f32[128,384], index: 1, kind: input, shape index: {}]   ;;  %s928_s2 = inlined_call_operand.hbm [shape: f32[1,384], index: 2, kind: input, shape index: {}]   ;;  %s929_s3 = inlined_call_operand.hbm [shape: f32[2,8,128], index: 3, kind: output, shape index: {}]  }
   0x1   :  { %10 = vsyncpa [#allocation3 + $0x1], 0 }
   0x2   :  { %11 = vsyncpa [#allocation6], 0 }
   0x3   :  { %12 = vsyncpa [#allocation4], 0 }
   0x4   :  { %14 = vsyncpa [#allocation4 + $0x1], 0  ;;  %s774_s12 = smov 0   ;;  %s776_s13 = smov 0  }
   0x5   :  { %s778_s14 = smov 0   ;;  %s780_s15 = smov 0  }
   0x6 LB: > { %s130_s18 = sshll.u32 %s927_s1, 4  ;;  %s798_s19 = sadd.s32 4294967295, %s748_s15   ;;  %s748_s15 = sphi %s780_s15, %s940_s15   ;;  %s744_s14 = sphi %s778_s14, %s939_s14   ;;  %s740_s13 = sphi %s776_s13, %s938_s13   ;;  %s736_s12 = sphi %s774_s12, %s937_s12   ;;  %s131_s18 = int_to_ptr.hbm [resolvable:$true] %s130_s18 }
   0x7   : > { %p499_p0 = scmp.ge.s32.totalorder %s748_s15, 1  ;;  %p41_p1 = scmp.eq.s32.totalorder %s798_s19, 0 }
   0x8   : > { %p119_p2 = scmp.lt.s32.totalorder %s748_s15, 3  ;;  %s750_s21 = smov [#allocation5]  }
   0x9   : > { %s132_s22 = sshll.u32 %s750_s21, 4  ;;  %s145_s25 = sshll.u32 %s928_s2, 4  ;;  %s133_s22 = int_to_ptr.vmem [resolvable:$true] %s132_s22  ;;  %s146_s25 = int_to_ptr.hbm [resolvable:$true] %s145_s25 }
   0xa   : > { %p803_p3 = pnand %p499_p0, %p119_p2  ;;  %s751_s26 = smov [#allocation7]  }
   0xb   : > { %s147_s27 = sshll.u32 %s751_s26, 4  ;;  %s752_s28 = smov 384   ;;  %s148_s27 = int_to_ptr.vmem [resolvable:$true] %s147_s27 }
   0xc   : > { %p527_p4 = pneg %p803_p3  ;;  %s753_s29 = smov 24  }
   0xd   : > { %s498_s30 = sadd.s32 4294967294, %s748_s15   ;;  %s817_s4 = sadd.s32 1, %s748_s15  }
   0xe   : > { %p528_p6 = pnand %p527_p4, %p41_p1  ;;  %s24_s5 = ssub.s32 %s748_s15, %s817_s4 }
   0xf   : > { %s27_s6 = sadd.s32 1, %s744_s14  ;;  %p25_p7 = scmp.eq.s32.totalorder %s24_s5, 0 }
  0x10   : > { %530 = dma.hbm_to_vmem [thread:$0]  (!%p528_p6), %s131_s18, 6144, %s133_s22, [#allocation6], %s752_s28, %s752_s28, %s753_s29  }
  0x11   : > { %533 = dma.hbm_to_vmem [thread:$0]  (!%p528_p6), %s146_s25, 48, %s148_s27, [#allocation6]  }
  0x12   : > { %p34_p8 = scmp.ne.s32.totalorder %s744_s14, %s740_s13  ;;  %p35_p9 = scmp.eq.s32.totalorder %s748_s15, 0 }
  0x13   : > { %p40_p10 = scmp.ne.s32.totalorder %s740_s13, %s736_s12  ;;  %p106_p13 = scmp.eq.s32.totalorder %s798_s19, 1 }
  0x14   : > { %s828_s7 = scalar_select %p25_p7, %s744_s14, %s27_s6  }
  0x15   : > { %p830_p11 = por %p35_p9, %p34_p8  ;;  %p836_p12 = por %p41_p1, %p40_p10 }
  0x16   : > { %p112_p0 = scmp.eq.s32.totalorder %s498_s30, 1  ;;  %p544_p2 = scmp.lt.s32.totalorder %s748_s15, 2 }
  0x17   : > { %s158_s10 = sand.u32 1, %s744_s14   ;;  %p843_p4 = por %p106_p13, %p34_p8 }
  0x18   : > { %p847_p6 = por %p112_p0, %p40_p10  ;;  %s503_s17 = sshll.u32 %s158_s10, 3 }
  0x19   : > { %s504_s18 = sshll.u32 %s748_s15, 3  ;;  %s162_s24 = scalar_lea.vmem [#allocation2], %s503_s17 }
  0x1a   : > { %s166_s23 = scalar_lea.hbm %s926_s0, %s504_s18  ;;  %s170_s25 = sshll.u32 %s162_s24, 4  ;;  %s171_s25 = int_to_ptr.vmem [resolvable:$true] %s170_s25 }
  0x1b   : > { %s168_s26 = sshll.u32 %s166_s23, 4  ;;  %p857_p7 = pnand %p544_p2, %p830_p11  ;;  %s169_s26 = int_to_ptr.hbm [resolvable:$true] %s168_s26 }
  0x1c   : > { %s159_s28 = scalar_lea.sflag [#allocation3], %s158_s10  ;;  %s648_s29 = sshra.s32 %s169_s26, 4  ;;  %s649_s29 = int_to_ptr.hbm [resolvable:$true] %s648_s29 }
  0x1d   : > { %s650_s30 = scalar_lea.hbm %s649_s29, 8  ;;  %p652_p9 = pneg %p857_p7 }
  0x1e   : > { %p651_p8 = scmp.ne.s32.totalorder %s649_s29, %s650_s30  ;;  %s655_s17 = scalar_lea.hbm %s926_s0, 16 }
  0x1f   : > { %p656_p11 = scmp.lt.s32.totalorder %s649_s29, %s926_s0  ;;  %p657_p0 = scmp.lt.s32.totalorder %s655_s17, %s650_s30 }
  0x20   : > { %p653_p10 = pnand %p652_p9, %p651_p8 }
  0x21   : > { %p658_p2 = por %p657_p0, %p656_p11 }
  0x22   : > { %p654_p13 = pneg %p653_p10 }
  0x24   : > { %p659_p5 = pnand %p658_p2, %p654_p13 }
  0x26   : > { %662 = shalt.err (!%p659_p5)
}
  0x27   : > { %537 = dma.hbm_to_vmem [thread:$0]  (!%p857_p7), %s169_s26, 128, %s171_s25, %s159_s28  }
  0x28   : > { %179 = sbr.rel (%p803_p3) target bundleno = 608 (0x260), region = 32  ;;  %s874_s10 = sand.u32 (!%p803_p3), 1, %s740_s13  }
  0x29   : > { %s506_s21 = sshll.u32 (!%p803_p3), %s874_s10, 3  ;;  %s182_s22 = scalar_lea.sflag (!%p803_p3), [#allocation3], %s874_s10 }
  0x2a   : > { %s880_s23 = scalar_lea.vmem (!%p803_p3), [#allocation2], %s506_s21 }
  0x2d   : > { %723 = dma.done.wait (%p836_p12), %s182_s22, 128  }
  0x2e   : > { %725 = vsyncadd (%p836_p12), %s182_s22, 4294967168 }
  0x2f   : > { %727 = dma.done.wait (%p41_p1), [#allocation6], 6192  }
  0x30   : > { %729 = vsyncadd (%p41_p1), [#allocation6], 4294961104  ;;  %v266_v0 = vld [vmem:[#allocation5 + $0x170] sm:$0xff]  ;;  %v265_v1 = vld [vmem:[#allocation5 + $0x168] sm:$0xff]  ;;  %vm357_vm0 = vcmask 64512   ;;  %s512_s20 = sshll.u32 %s798_s19, 3 }
  0x31   : > { %v263_v2 = vld [vmem:[#allocation5 + $0x158] sm:$0xff]  ;;  %296 = vmatpush.msra.mxu1 %v266_v0  ;;  %276 = vmatpush.msra.mxu0 %v265_v1  ;;  %v262_v3 = vld [vmem:[#allocation5 + $0x150] sm:$0xff]  ;;  %v260_v4 = vld [vmem:[#allocation5 + $0x140] sm:$0xff]  ;;  %s404_s25 = scalar_lea.hbm %s929_s3, %s512_s20  ;;  %s218_s26 = scalar_lea.vmem [#allocation8], %s506_s21 }
  0x32   : > { %v259_v5 = vld [vmem:[#allocation5 + $0x138] sm:$0xff]  ;;  %v257_v6 = vld [vmem:[#allocation5 + $0x128] sm:$0xff]  ;;  %v256_v7 = vld [vmem:[#allocation5 + $0x120] sm:$0xff]  ;;  %s406_s27 = sshll.u32 %s218_s26, 4  ;;  %s408_s28 = sshll.u32 %s404_s25, 4  ;;  %s407_s27 = int_to_ptr.vmem [resolvable:$true] %s406_s27  ;;  %s409_s28 = int_to_ptr.hbm [resolvable:$true] %s408_s28 }
  0x33   : > { %297 = vmatpush.msra.mxu1 %v263_v2  ;;  %277 = vmatpush.msra.mxu0 %v262_v3  ;;  %v254_v8 = vld [vmem:[#allocation5 + $0x110] sm:$0xff]  ;;  %v253_v9 = vld [vmem:[#allocation5 + $0x108] sm:$0xff]  ;;  %v251_v10 = vld [vmem:[#allocation5 + $0xf8] sm:$0xff]  ;;  %s394_s29 = scalar_lea.sflag [#allocation4], %s874_s10  ;;  %s692_s30 = sshra.s32 %s409_s28, 4  ;;  %s693_s30 = int_to_ptr.hbm [resolvable:$true] %s692_s30 }
  0x34   : > { %v250_v11 = vld [vmem:[#allocation5 + $0xf0] sm:$0xff]  ;;  %v248_v12 = vld [vmem:[#allocation5 + $0xe0] sm:$0xff]  ;;  %v247_v13 = vld [vmem:[#allocation5 + $0xd8] sm:$0xff]  ;;  %s694_s19 = scalar_lea.hbm %s693_s30, 8  ;;  %s698_s17 = scalar_lea.hbm %s929_s3, 16 }
  0x35   : > { %298 = vmatpush.msra.mxu1 %v260_v4  ;;  %278 = vmatpush.msra.mxu0 %v259_v5  ;;  %v245_v14 = vld [vmem:[#allocation5 + $0xc8] sm:$0xff]  ;;  %v244_v15 = vld [vmem:[#allocation5 + $0xc0] sm:$0xff]  ;;  %v242_v16 = vld [vmem:[#allocation5 + $0xb0] sm:$0xff]  ;;  %p695_p1 = scmp.ne.s32.totalorder %s693_s30, %s694_s19  ;;  %p699_p12 = scmp.lt.s32.totalorder %s693_s30, %s929_s3 }
  0x36   : > { %v241_v17 = vld [vmem:[#allocation5 + $0xa8] sm:$0xff]  ;;  %v239_v18 = vld [vmem:[#allocation5 + $0x98] sm:$0xff]  ;;  %v238_v19 = vld [vmem:[#allocation5 + $0x90] sm:$0xff]  ;;  %p700_p7 = scmp.lt.s32.totalorder %s698_s17, %s694_s19 }
  0x37   : > { %299 = vmatpush.msra.mxu1 %v257_v6  ;;  %279 = vmatpush.msra.mxu0 %v256_v7  ;;  %v236_v20 = vld [vmem:[#allocation5 + $0x80] sm:$0xff]  ;;  %v235_v21 = vld [vmem:[#allocation5 + $0x78] sm:$0xff]  ;;  %v233_v22 = vld [vmem:[#allocation5 + $0x68] sm:$0xff]  ;;  %p696_p3 = pnand %p695_p1, %p843_p4 }
  0x38   : > { %v232_v23 = vld [vmem:[#allocation5 + $0x60] sm:$0xff]  ;;  %v230_v24 = vld [vmem:[#allocation5 + $0x50] sm:$0xff]  ;;  %v229_v25 = vld [vmem:[#allocation5 + $0x48] sm:$0xff]  ;;  %p701_p8 = por %p700_p7, %p699_p12 }
  0x39   : > { %300 = vmatpush.msra.mxu1 %v254_v8  ;;  %280 = vmatpush.msra.mxu0 %v253_v9  ;;  %v227_v26 = vld [vmem:[#allocation5 + $0x38] sm:$0xff]  ;;  %v226_v27 = vld [vmem:[#allocation5 + $0x30] sm:$0xff]  ;;  %v224_v28 = vld [vmem:[#allocation5 + $0x20] sm:$0xff]  ;;  %p697_p5 = pneg %p696_p3 }
  0x3a   : > { %v223_v29 = vld [vmem:[#allocation5 + $0x18] sm:$0xff]  ;;  %v221_v30 = vld [vmem:[#allocation5 + $0x8] sm:$0xff]  ;;  %v220_v31 = vld [vmem:[#allocation5] sm:$0xff] }
  0x3b   : > { %301 = vmatpush.msra.mxu1 %v251_v10  ;;  %281 = vmatpush.msra.mxu0 %v250_v11  ;;  %v219_v32 = vld [vmem:[%s880_s23] sm:$0xff]  ;;  %v264_v34 = vld [vmem:[#allocation5 + $0x160] sm:$0xff]  ;;  %v261_v35 = vld [vmem:[#allocation5 + $0x148] sm:$0xff]  ;;  %p702_p9 = pnand %p701_p8, %p697_p5 }
  0x3c   : > { %v267_v33 = vld [vmem:[#allocation5 + $0x178] sm:$0xff]  ;;  %v258_v36 = vld [vmem:[#allocation5 + $0x130] sm:$0xff]  ;;  %v252_v38 = vld [vmem:[#allocation5 + $0x100] sm:$0xff] }
  0x3d   : > { %302 = vmatpush.msra.mxu1 %v248_v12  ;;  %282 = vmatpush.msra.mxu0 %v247_v13  ;;  %v255_v37 = vld [vmem:[#allocation5 + $0x118] sm:$0xff]  ;;  %v249_v39 = vld [vmem:[#allocation5 + $0xe8] sm:$0xff]  ;;  %v246_v40 = vld [vmem:[#allocation5 + $0xd0] sm:$0xff] }
  0x3e   : > { %316 = vmatpush.msra.mxu2 %v267_v33  ;;  %v243_v41 = vld [vmem:[#allocation5 + $0xb8] sm:$0xff]  ;;  %v240_v42 = vld [vmem:[#allocation5 + $0xa0] sm:$0xff]  ;;  %v237_v43 = vld [vmem:[#allocation5 + $0x88] sm:$0xff] }
  0x3f   : > { %303 = vmatpush.msra.mxu1 %v245_v14  ;;  %283 = vmatpush.msra.mxu0 %v244_v15  ;;  %v268_v44 = vld [vmem:[#allocation7] sm:$0x7]  ;;  %v234_v45 = vld [vmem:[#allocation5 + $0x70] sm:$0xff]  ;;  %v231_v46 = vld [vmem:[#allocation5 + $0x58] sm:$0xff] }
  0x40   : > { %317 = vmatpush.msra.mxu2 %v264_v34  ;;  %v270_v47 = vperm.slane %v268_v44, 0  ;;  %v271_v48 = vperm.slane %v268_v44, 1  ;;  %v228_v49 = vld [vmem:[#allocation5 + $0x40] sm:$0xff]  ;;  %v225_v52 = vld [vmem:[#allocation5 + $0x28] sm:$0xff]  ;;  %v222_v55 = vld [vmem:[#allocation5 + $0x10] sm:$0xff]  ;;  %v272_v59 = vperm.slane %v268_v44, 2 }
  0x41   : > { %304 = vmatpush.msra.mxu1 %v242_v16  ;;  %284 = vmatpush.msra.mxu0 %v241_v17 }
  0x42   : > { %318 = vmatpush.msra.mxu2 %v261_v35 }
  0x43   : > { %305 = vmatpush.msra.mxu1 %v239_v18  ;;  %285 = vmatpush.msra.mxu0 %v238_v19 }
  0x44   : > { %319 = vmatpush.msra.mxu2 %v258_v36 }
  0x45   : > { %306 = vmatpush.msra.mxu1 %v236_v20  ;;  %286 = vmatpush.msra.mxu0 %v235_v21 }
  0x46   : > { %320 = vmatpush.msra.mxu2 %v255_v37 }
  0x47   : > { %307 = vmatpush.msra.mxu1 %v233_v22  ;;  %287 = vmatpush.msra.mxu0 %v232_v23 }
  0x48   : > { %321 = vmatpush.msra.mxu2 %v252_v38 }
  0x49   : > { %308 = vmatpush.msra.mxu1 %v230_v24  ;;  %288 = vmatpush.msra.mxu0 %v229_v25 }
  0x4a   : > { %322 = vmatpush.msra.mxu2 %v249_v39 }
  0x4b   : > { %309 = vmatpush.msra.mxu1 %v227_v26  ;;  %289 = vmatpush.msra.mxu0 %v226_v27 }
  0x4c   : > { %323 = vmatpush.msra.mxu2 %v246_v40 }
  0x4d   : > { %310 = vmatpush.msra.mxu1 %v224_v28  ;;  %290 = vmatpush.msra.mxu0 %v223_v29 }
  0x4e   : > { %324 = vmatpush.msra.mxu2 %v243_v41 }
  0x4f   : > { %311 = vmatpush.msra.mxu1 %v221_v30  ;;  %291 = vmatpush.msra.mxu0 %v220_v31 }
  0x50   : > { %312 = vmatmul.f32.vlgmr.msra.gmra.mxu1 %v219_v32  ;;  %292 = vmatmul.f32.vlgmr.msra.gmra.mxu0 %v219_v32 }
  0x51   : > { %325 = vmatpush.msra.mxu2 %v240_v42 }
  0x53   : > { %326 = vmatpush.msra.mxu2 %v237_v43 }
  0x55   : > { %327 = vmatpush.msra.mxu2 %v234_v45 }
  0x57   : > { %328 = vmatpush.msra.mxu2 %v231_v46 }
  0x59   : > { %329 = vmatpush.msra.mxu2 %v228_v49 }
  0x5b   : > { %330 = vmatpush.msra.mxu2 %v225_v52 }
  0x5d   : > { %331 = vmatpush.msra.mxu2 %v222_v55 }
  0x5e   : > { %332 = vmatmul.f32.vlgmr.msra.gmra.mxu2 %v219_v32 }
  0xcd   : > { %v313_v50 = vpop.f32.mrf.mxu1  ;;  %v293_v51 = vpop.f32.mrf.mxu0 }
  0xce   : > { %v294_v53 = vadd.f32 %v293_v51, %v270_v47  ;;  %v314_v54 = vadd.f32 %v313_v50, %v271_v48 }
  0xd0   : > { %v336_v56 = vmul.f32 0.17677669, %v294_v53  ;;  %352 = vmatpush.xpose.msra.mxu3 %v314_v54 }
  0xd3   : > { %353 = vmatmul.f32.vlgmr.msra.gmra.mxu3 %v336_v56 }
  0xe1   : > { %v333_v60 = vpop.f32.mrf.mxu2 }
  0xe2   : > { %v334_v61 = vadd.f32 %v333_v60, %v272_v59 }
  0xe4   : > { %385 = vmatpush.msrb.mxu3 %v334_v61 }
 0x156   : > { %v354_v57 = vpop.f32.mrf.mxu3 }
 0x157   : > { %v358_v58 = vsel %vm357_vm0, %v354_v57, -inf }
 0x158   : > { %359 = vmax.xlane.f32.xlu0 %v358_v58 }
 0x1cb   : > { %v360_v62 = vpop.xlane.xlu0 %359 }
 0x1cc   : > { %v361_v63 = vsub.f32 %v354_v57, %v360_v62 }
 0x1ce   : > { %v362_v0 = vmul.f32 1.442695, %v361_v63 }
 0x1d0   : > { %584 = vpow2.f32 %v362_v0 }
 0x1d6   : > { %v585_v1 = vpop.eup %584 }
 0x1d7   : > { %510 = vmatmul.msk.f32.vlgmr.msrb.gmra.mxu3 %vm357_vm0, %v585_v1  ;;  %v364_v2 = vsel %vm357_vm0, %v585_v1, 0.0 }
 0x1d8   : > { %365 = vadd.xlane.f32.xlu0 %v364_v2 }
 0x24b   : > { %v366_v3 = vpop.xlane.xlu0 %365 }
 0x24c   : > { %586 = vrcp.f32 %v366_v3 }
 0x252   : > { %v587_v4 = vpop.eup %586 }
 0x25a   : > { %v387_v5 = vpop.f32.mrf.mxu3 }
 0x25b   : > { %v391_v6 = vmul.f32 %v587_v4, %v387_v5 }
 0x25d   : > { %392 = vst [vmem:[%s218_s26] sm:$0xff] %v391_v6 }
 0x25e   : > { %705 = shalt.err (!%p702_p9)
}
 0x25f   : > { %525 = dma.vmem_to_hbm [thread:$0]  (%p843_p4), %s407_s27, 128, %s409_s28, %s394_s29  }
 0x260 PF: > { %s420_s10 = sand.u32 1, %s736_s12   ;;  %p936_p10 = scmp.ge.s32.totalorder %s748_s15, 2 }
 0x261   : > { %s421_s21 = scalar_lea.sflag [#allocation4], %s420_s10 }
 0x262   : > { %p539_p13 = pnand %p936_p10, %p847_p6 }
 0x264   : > { %p540_p11 = pneg %p539_p13 }
 0x266   : > { %731 = dma.done.wait (%p540_p11), %s421_s21, 128  }
 0x267   : > { %733 = vsyncadd (%p540_p11), %s421_s21, 4294967168  ;;  %p17_p0 = scmp.ge.s32.totalorder %s817_s4, 4   ;;  %s937_s12 = smov %s740_s13 }
 0x268   : > { %s938_s13 = smov %s744_s14  ;;  %s939_s14 = smov %s828_s7 }
 0x269   : > { %s940_s15 = smov %s817_s4  ;;  %19 = sbr.rel (!%p17_p0) target bundleno = 6 (0x6), region = 85 }
 0x26e   :  { %427 = vsyncpa [#allocation3], 1 }
 0x26f   :  { %429 = vsyncpa [#allocation3 + $0x1], 1 }
 0x270   :  { %430 = vsyncpa [#allocation6], 1 }
 0x271   :  { %431 = vsyncpa [#allocation4], 1 }
 0x272   :  { %433 = vsyncpa [#allocation4 + $0x1], 1 }

</bundles_post_ra>
